<compile_context>
chip_gen: v6e
topology: v6e:2x2x1
jax: 0.10.0
libtpu: 0.0.40
codegen_flags: <defaults>
</compile_context>

<pallas_src>
import jax
import jax.numpy as jnp
from jax import lax
from jax.experimental import pallas as pl
from jax.experimental.pallas import tpu as pltpu


# ----------------------------------------------------------------------------
# Kernel: one grid step processes a block of TB bags (all their instances).
# ----------------------------------------------------------------------------
def hopfield_mil_kernel(
    x_ref,        # (TB*N, F)  instances of TB bags (bag-major), compute dtype
    w1_ref,       # (F, E)     emb layer 1 weight
    w2_ref,       # (E, E)     emb layer 2 weight
    wscore_ref,   # (E, D)     folded, beta-scaled score projection (per-head
                  #            scores duplicated across each head's hidden lanes)
    wval_ref,     # (E, D)     folded value projection  (wk @ wv)
    wo_ref,       # (D, E)     output projection
    slab_ref,     # (8, max(E, D)) f32 bias/classifier slab:
                  #   row 0: b1(E)  row 1: b2(E)  row 2: bv(D)
                  #   row 3: bo(E)  row 4: wc(E)  row 5: bc(1)
    out_ref,      # (1, TB)    logits of this bag block (lane-dense)
):
    cdt = w1_ref.dtype                     # compute dtype for MXU operands
    tb = out_ref.shape[-1]
    tbn = x_ref.shape[0]
    n = tbn // tb                          # instances per bag
    E = w1_ref.shape[-1]
    D = wscore_ref.shape[-1]

    slab = slab_ref[...]                   # (8, max(E, D)) f32
    b1 = slab[0:1, :E]
    b2 = slab[1:2, :E]
    bv = slab[2:3, :D]
    bo = slab[3:4, :E]
    wc = slab[4:5, :E]
    bc = slab[5:6, 0:1]

    x = x_ref[...]                         # (TB*N, F), already compute dtype

    # ---- embedding MLP: Linear + ReLU (x2), batched over all TB*N rows -----
    h = jnp.dot(x, w1_ref[...], preferred_element_type=jnp.float32) + b1
    h = jnp.maximum(h, 0.0)
    h = jnp.dot(h.astype(cdt), w2_ref[...],
                preferred_element_type=jnp.float32) + b2
    h = jnp.maximum(h, 0.0)                                          # (TB*N, E) f32
    hc = h.astype(cdt)

    # ---- Hopfield pooling (folded): scores + values straight from h --------
    # s[r, d] = beta * <q_head(d), k_head(d)[r]>  (duplicated across head lanes)
    s = jnp.dot(hc, wscore_ref[...],
                preferred_element_type=jnp.float32)                  # (TB*N, D) f32
    v = jnp.dot(hc, wval_ref[...],
                preferred_element_type=jnp.float32) + bv             # (TB*N, D) f32

    s3 = s.reshape(tb, n, D)
    v3 = v.reshape(tb, n, D)

    # per-(bag, head) softmax over the N instances, done at D-lane width on
    # the duplicated scores (numerically stable, f32)
    m = jnp.max(s3, axis=1, keepdims=True)                           # (TB, 1, D)
    p = jnp.exp(s3 - m)
    denom = jnp.sum(p, axis=1, keepdims=True)                        # (TB, 1, D)
    p = p * pl.reciprocal(denom, approx=True)                        # (TB, N, D)

    ctx = jnp.sum(p * v3, axis=1)                                    # (TB, D) f32

    # ---- output projection + classifier (ReLU -> Linear(E,1)), lane-dense ---
    out = jnp.dot(ctx.astype(cdt), wo_ref[...],
                  preferred_element_type=jnp.float32) + bo           # (TB, E) f32
    out = jnp.maximum(out, 0.0)
    # (1, E) x (TB, E)^T -> (1, TB): bags land on the lane axis directly.
    y = lax.dot_general(wc, out, (((1,), (1,)), ((), ())),
                        preferred_element_type=jnp.float32)          # (1, TB)
    out_ref[...] = y + bc


# ----------------------------------------------------------------------------
# Wrapper helpers
# ----------------------------------------------------------------------------
def _fold_pooling_weights(params, num_heads, hidden_size, beta):
    """Fold q/wq/wk/wv into two (E, D) matrices (constant algebra)."""
    D = num_heads * hidden_size
    q_vec = (params["q"] @ params["wq"]).reshape(D)                  # (D,)
    head_of_d = jnp.arange(D, dtype=jnp.int32) // hidden_size
    mask = (head_of_d[:, None]
            == jnp.arange(num_heads, dtype=jnp.int32)[None, :]).astype(jnp.float32)
    w_score = jnp.float32(beta) * (params["wk"] * q_vec[None, :]) @ mask   # (E, H)
    w_score_exp = w_score @ mask.T                                         # (E, D)
    w_val = params["wk"] @ params["wv"]                                    # (E, D)
    return w_score_exp, w_val


def _pack_bias_slab(params, E, D):
    """Pack the tiny resident operands into one (8, max(E, D)) f32 slab."""
    W = max(E, D)
    slab = jnp.zeros((8, W), jnp.float32)
    slab = slab.at[0, :E].set(params["b1"].reshape(E))
    slab = slab.at[1, :E].set(params["b2"].reshape(E))
    slab = slab.at[2, :D].set(params["bv"].reshape(D))
    slab = slab.at[3, :E].set(params["bo"].reshape(E))
    slab = slab.at[4, :E].set(params["wc"].reshape(E))
    slab = slab.at[5, 0].set(params["bc"].reshape(()))
    return slab


def _per_bag_vmem_bytes(N, F, E, D, dtype_bytes):
    # x tile (double-buffered, compute dtype) + f32 intermediates (h, s, v, p)
    return N * (2 * F * dtype_bytes + 2 * E * 4 + 4 * D * 4)


def _pick_block_bags(B, N, F, E, D, requested, dtype_bytes):
    def round8(v):
        return max(8, ((int(v) + 7) // 8) * 8)

    if requested is not None:
        return round8(requested)

    per_bag = max(1, _per_bag_vmem_bytes(N, F, E, D, dtype_bytes))
    budget = 20 << 20                      # conservative: fits v5e/v7x scoped VMEM
    TB = max(8, min(512, budget // per_bag))
    TB = max(8, (TB // 8) * 8)
    TB = min(TB, round8(B))                # no wasted grid steps on padded bags
    # Keep at least two grid blocks when B allows, so v7x's two TensorCores
    # both get work (harmless extra 0.35 us step on single-TC v5e/v6e).
    if B > 8 and -(-B // TB) < 2:
        TB = round8(-(-B // 2))
    return max(8, TB)


# ----------------------------------------------------------------------------
# Wrapper: pads bags to a multiple of TB, builds BlockSpecs / grid, calls
# pallas_call, and trims the lane-dense logit slab back to (B,).
# ----------------------------------------------------------------------------
def hopfield_mil_forward(x, params, *, num_heads, hidden_size, beta,
                         block_bags=None, compute_dtype=jnp.bfloat16):
    B, N, F = x.shape
    E = params["w1"].shape[1]
    D = num_heads * hidden_size
    dtype_bytes = jnp.dtype(compute_dtype).itemsize

    TB = _pick_block_bags(B, N, F, E, D, block_bags, dtype_bytes)
    num_blocks = -(-B // TB)
    B_pad = num_blocks * TB

    x = x.astype(jnp.float32)
    if B_pad != B:
        x = jnp.pad(x, ((0, B_pad - B), (0, 0), (0, 0)))   # tail-only padding
    # Flatten bags*instances so the kernel sees a 2-D (TB*N, F) tile per step.
    x2d = x.reshape(B_pad * N, F).astype(compute_dtype)

    w_score_exp, w_val = _fold_pooling_weights(params, num_heads, hidden_size, beta)
    slab = _pack_bias_slab(params, E, D)

    cast = lambda a: a.astype(compute_dtype)
    weights = [
        cast(params["w1"]),
        cast(params["w2"]),
        cast(w_score_exp),      # folded, beta-scaled score projection (E, D)
        cast(w_val),            # folded value projection (E, D)
        cast(params["wo"]),
        slab,                   # biases / classifier row stay f32
    ]

    def resident(shape):
        rank = len(shape)
        return pl.BlockSpec(shape, lambda b, _r=rank: (0,) * _r)

    in_specs = [pl.BlockSpec((TB * N, F), lambda b: (b, 0))]         # streamed bag block
    in_specs += [resident(w.shape) for w in weights]                 # weights resident

    footprint = (TB * _per_bag_vmem_bytes(N, F, E, D, dtype_bytes)
                 + sum(int(w.size) * w.dtype.itemsize for w in weights))
    vmem_limit = int(max(32 << 20, min(56 << 20, 2 * footprint)))

    out = pl.pallas_call(
        hopfield_mil_kernel,
        out_shape=jax.ShapeDtypeStruct((num_blocks, 1, TB), jnp.float32),
        grid_spec=pltpu.PrefetchScalarGridSpec(
            num_scalar_prefetch=0,
            grid=(num_blocks,),
            in_specs=in_specs,
            out_specs=pl.BlockSpec((None, 1, TB), lambda b: (b, 0, 0)),
        ),
        compiler_params=pltpu.CompilerParams(
            dimension_semantics=("parallel",),
            vmem_limit_bytes=vmem_limit,
        ),
    )(x2d, *weights)

    return out.reshape(B_pad)[:B]                                    # Y_prob: (B,)


# ----------------------------------------------------------------------------
# Pure-JAX reference (mirrors the PyTorch forward) for a sanity check.
# ----------------------------------------------------------------------------
def hopfield_mil_reference(x, params, *, num_heads, hidden_size, beta):
    B, N, F = x.shape
    h = jnp.maximum(x.reshape(B * N, F) @ params["w1"] + params["b1"], 0.0)
    h = jnp.maximum(h @ params["w2"] + params["b2"], 0.0)
    h = h.reshape(B, N, -1)
    q = params["q"] @ params["wq"]                                    # (1, D)
    k = h @ params["wk"]                                              # (B, N, D)
    v = k @ params["wv"] + params["bv"]                               # (B, N, D)
    qh = q.reshape(num_heads, hidden_size)
    kh = k.reshape(B, N, num_heads, hidden_size)
    vh = v.reshape(B, N, num_heads, hidden_size)
    s = beta * jnp.einsum("bnhd,hd->bnh", kh, qh)
    p = jax.nn.softmax(s, axis=1)                                     # over instances
    ctx = jnp.einsum("bnh,bnhd->bhd", p, vh).reshape(B, num_heads * hidden_size)
    out = ctx @ params["wo"] + params["bo"]
    y = jnp.maximum(out, 0.0) @ params["wc"].T + params["bc"]
    return y.reshape(B)


# ----------------------------------------------------------------------------
# Deterministic parameter construction (synthetic weights, no checkpoint).
# ----------------------------------------------------------------------------
def init_params(key, feat_dim, emb_dims, num_heads, hidden_size):
    D = num_heads * hidden_size
    keys = jax.random.split(key, 16)

    def lin(k, fan_in, fan_out):
        scale = 1.0 / jnp.sqrt(jnp.float32(fan_in))
        return scale * jax.random.normal(k, (fan_in, fan_out), jnp.float32)

    return {
        "w1": lin(keys[0], feat_dim, emb_dims),
        "b1": 0.01 * jax.random.normal(keys[1], (1, emb_dims), jnp.float32),
        "w2": lin(keys[2], emb_dims, emb_dims),
        "b2": 0.01 * jax.random.normal(keys[3], (1, emb_dims), jnp.float32),
        "q":  jax.random.normal(keys[4], (1, emb_dims), jnp.float32),   # pooling query
        "wq": lin(keys[5], emb_dims, D),
        "wk": lin(keys[6], emb_dims, D),
        "wv": lin(keys[7], D, D),
        "bv": 0.01 * jax.random.normal(keys[8], (1, D), jnp.float32),
        "wo": lin(keys[9], D, emb_dims),
        "bo": 0.01 * jax.random.normal(keys[10], (1, emb_dims), jnp.float32),
        # classifier weight kept in PyTorch nn.Linear layout (out=1, in=E)
        "wc": lin(keys[11], emb_dims, 1).T,
        "bc": 0.01 * jax.random.normal(keys[12], (1, 1), jnp.float32),
    }


if __name__ == "__main__":
    # Small shapes consistent with the MIL forward:
    #   B bags, N instances per bag, F features per instance.
    B, N, F = 2, 8, 32
    emb_dims = 32        # E
    num_heads = 4
    hidden_size = 16     # per-head association dim -> D = 64
    beta = 1.0 / (hidden_size ** 0.5)   # HopfieldPooling default scaling 1/sqrt(d)

    key = jax.random.PRNGKey(0)
    k_x, k_p = jax.random.split(key)
    x = jax.random.normal(k_x, (B, N, F), jnp.float32)
    params = init_params(k_p, F, emb_dims, num_heads, hidden_size)

    y_ref = hopfield_mil_reference(
        x, params, num_heads=num_heads, hidden_size=hidden_size, beta=beta
    )

    # f32 compute path: validates the folded algebra closely.
    y_f32 = hopfield_mil_forward(
        x, params, num_heads=num_heads, hidden_size=hidden_size, beta=beta,
        compute_dtype=jnp.float32,
    )
    y_f32 = jax.block_until_ready(y_f32)
    assert y_f32.shape == (B,) and y_f32.dtype == jnp.float32
    assert bool(jnp.all(jnp.isfinite(y_f32)))
    assert bool(jnp.allclose(y_f32, y_ref, rtol=2e-2, atol=2e-2)), (y_f32, y_ref)

    # Default bf16 MXU path (f32 accumulation / f32 softmax) — looser tolerance.
    y_prob = hopfield_mil_forward(
        x, params, num_heads=num_heads, hidden_size=hidden_size, beta=beta,
    )
    y_prob = jax.block_until_ready(y_prob)
    assert y_prob.shape == (B,) and y_prob.dtype == jnp.float32
    assert bool(jnp.all(jnp.isfinite(y_prob)))
    assert bool(jnp.allclose(y_prob, y_ref, rtol=1e-1, atol=1e-1)), (y_prob, y_ref)

    print("KERNEL_OK")
</pallas_src>

<mosaic_0001>
module attributes {stable_mosaic.version = 11 : i64} {
  func.func @hopfield_mil_kernel(%arg0: i32, %arg1: memref<64x32xf32, #tpu.memory_space<vmem>>, %arg2: memref<32x32xf32, #tpu.memory_space<vmem>>, %arg3: memref<32x32xf32, #tpu.memory_space<vmem>>, %arg4: memref<32x64xf32, #tpu.memory_space<vmem>>, %arg5: memref<32x64xf32, #tpu.memory_space<vmem>>, %arg6: memref<64x32xf32, #tpu.memory_space<vmem>>, %arg7: memref<8x64xf32, #tpu.memory_space<vmem>>, %arg8: memref<1x1x8xf32, #tpu.memory_space<vmem>>) attributes {dimension_semantics = [#tpu.dimension_semantics<parallel>], iteration_bounds = array<i64: 1>, scalar_prefetch = 0 : i64, scratch_operands = 0 : i64, tpu.core_type = #tpu.core_type<tc>, window_params = [{transform_indices = @transform_0, window_bounds = array<i64: 64, 32>}, {pipeline_mode = #tpu.pipeline_mode<synchronous>, transform_indices = @transform_1, window_bounds = array<i64: 32, 32>}, {pipeline_mode = #tpu.pipeline_mode<synchronous>, transform_indices = @transform_2, window_bounds = array<i64: 32, 32>}, {pipeline_mode = #tpu.pipeline_mode<synchronous>, transform_indices = @transform_3, window_bounds = array<i64: 32, 64>}, {pipeline_mode = #tpu.pipeline_mode<synchronous>, transform_indices = @transform_4, window_bounds = array<i64: 32, 64>}, {pipeline_mode = #tpu.pipeline_mode<synchronous>, transform_indices = @transform_5, window_bounds = array<i64: 64, 32>}, {pipeline_mode = #tpu.pipeline_mode<synchronous>, transform_indices = @transform_6, window_bounds = array<i64: 8, 64>}, {transform_indices = @transform_7, window_bounds = array<i64: 1, 1, 8>}]} {
    %c0 = arith.constant 0 : index
    %c0_0 = arith.constant 0 : index
    %0 = vector.load %arg7[%c0, %c0_0] : memref<8x64xf32, #tpu.memory_space<vmem>>, vector<8x64xf32>
    %1 = vector.extract_strided_slice %0 {offsets = [0, 0], sizes = [1, 32], strides = [1, 1]} : vector<8x64xf32> to vector<1x32xf32>
    %2 = vector.extract_strided_slice %0 {offsets = [1, 0], sizes = [1, 32], strides = [1, 1]} : vector<8x64xf32> to vector<1x32xf32>
    %3 = vector.extract_strided_slice %0 {offsets = [2, 0], sizes = [1, 64], strides = [1, 1]} : vector<8x64xf32> to vector<1x64xf32>
    %4 = vector.extract_strided_slice %0 {offsets = [3, 0], sizes = [1, 32], strides = [1, 1]} : vector<8x64xf32> to vector<1x32xf32>
    %5 = vector.extract_strided_slice %0 {offsets = [4, 0], sizes = [1, 32], strides = [1, 1]} : vector<8x64xf32> to vector<1x32xf32>
    %6 = vector.extract_strided_slice %0 {offsets = [5, 0], sizes = [1, 1], strides = [1, 1]} : vector<8x64xf32> to vector<1x1xf32>
    %c0_1 = arith.constant 0 : index
    %c0_2 = arith.constant 0 : index
    %7 = vector.load %arg1[%c0_1, %c0_2] : memref<64x32xf32, #tpu.memory_space<vmem>>, vector<64x32xf32>
    %c0_3 = arith.constant 0 : index
    %c0_4 = arith.constant 0 : index
    %8 = vector.load %arg2[%c0_3, %c0_4] : memref<32x32xf32, #tpu.memory_space<vmem>>, vector<32x32xf32>
    %cst = arith.constant dense<0.000000e+00> : vector<64x32xf32>
    %9 = tpu.matmul %7, %8, %cst {dimension_numbers = #tpu.dot_dimension_numbers<[1], [0], [0], [1], [0, 0, 1, 1], [], []>} : vector<64x32xf32>, vector<32x32xf32>, vector<64x32xf32> -> vector<64x32xf32>
    %10 = vector.broadcast %1 : vector<1x32xf32> to vector<64x32xf32>
    %11 = arith.addf %9, %10 : vector<64x32xf32>
    %cst_5 = arith.constant 0.000000e+00 : f32
    %12 = vector.broadcast %cst_5 : f32 to vector<64x32xf32>
    %13 = arith.maximumf %11, %12 : vector<64x32xf32>
    %c0_6 = arith.constant 0 : index
    %c0_7 = arith.constant 0 : index
    %14 = vector.load %arg3[%c0_6, %c0_7] : memref<32x32xf32, #tpu.memory_space<vmem>>, vector<32x32xf32>
    %cst_8 = arith.constant dense<0.000000e+00> : vector<64x32xf32>
    %15 = tpu.matmul %13, %14, %cst_8 {dimension_numbers = #tpu.dot_dimension_numbers<[1], [0], [0], [1], [0, 0, 1, 1], [], []>} : vector<64x32xf32>, vector<32x32xf32>, vector<64x32xf32> -> vector<64x32xf32>
    %16 = vector.broadcast %2 : vector<1x32xf32> to vector<64x32xf32>
    %17 = arith.addf %15, %16 : vector<64x32xf32>
    %cst_9 = arith.constant 0.000000e+00 : f32
    %18 = vector.broadcast %cst_9 : f32 to vector<64x32xf32>
    %19 = arith.maximumf %17, %18 : vector<64x32xf32>
    %c0_10 = arith.constant 0 : index
    %c0_11 = arith.constant 0 : index
    %20 = vector.load %arg4[%c0_10, %c0_11] : memref<32x64xf32, #tpu.memory_space<vmem>>, vector<32x64xf32>
    %cst_12 = arith.constant dense<0.000000e+00> : vector<64x64xf32>
    %21 = tpu.matmul %19, %20, %cst_12 {dimension_numbers = #tpu.dot_dimension_numbers<[1], [0], [0], [1], [0, 0, 1, 1], [], []>} : vector<64x32xf32>, vector<32x64xf32>, vector<64x64xf32> -> vector<64x64xf32>
    %c0_13 = arith.constant 0 : index
    %c0_14 = arith.constant 0 : index
    %22 = vector.load %arg5[%c0_13, %c0_14] : memref<32x64xf32, #tpu.memory_space<vmem>>, vector<32x64xf32>
    %cst_15 = arith.constant dense<0.000000e+00> : vector<64x64xf32>
    %23 = tpu.matmul %19, %22, %cst_15 {dimension_numbers = #tpu.dot_dimension_numbers<[1], [0], [0], [1], [0, 0, 1, 1], [], []>} : vector<64x32xf32>, vector<32x64xf32>, vector<64x64xf32> -> vector<64x64xf32>
    %24 = vector.broadcast %3 : vector<1x64xf32> to vector<64x64xf32>
    %25 = arith.addf %23, %24 : vector<64x64xf32>
    %26 = vector.shape_cast %21 : vector<64x64xf32> to vector<8x8x64xf32>
    %27 = vector.shape_cast %25 : vector<64x64xf32> to vector<8x8x64xf32>
    %cst_16 = arith.constant dense<0xFF800000> : vector<8x64xf32>
    %28 = vector.multi_reduction <maximumf>, %26, %cst_16 [1] : vector<8x8x64xf32> to vector<8x64xf32>
    %29 = vector.shape_cast %28 : vector<8x64xf32> to vector<8x1x64xf32>
    %30 = vector.broadcast %29 : vector<8x1x64xf32> to vector<8x8x64xf32>
    %31 = arith.subf %26, %30 : vector<8x8x64xf32>
    %32 = math.exp %31 : vector<8x8x64xf32>
    %cst_17 = arith.constant dense<0.000000e+00> : vector<8x64xf32>
    %33 = vector.multi_reduction <add>, %32, %cst_17 [1] : vector<8x8x64xf32> to vector<8x64xf32>
    %34 = vector.shape_cast %33 : vector<8x64xf32> to vector<8x1x64xf32>
    %35 = tpu.reciprocal %34 {approx = true} : vector<8x1x64xf32> -> vector<8x1x64xf32>
    %36 = vector.broadcast %35 : vector<8x1x64xf32> to vector<8x8x64xf32>
    %37 = arith.mulf %32, %36 : vector<8x8x64xf32>
    %38 = arith.mulf %37, %27 : vector<8x8x64xf32>
    %cst_18 = arith.constant dense<0.000000e+00> : vector<8x64xf32>
    %39 = vector.multi_reduction <add>, %38, %cst_18 [1] : vector<8x8x64xf32> to vector<8x64xf32>
    %c0_19 = arith.constant 0 : index
    %c0_20 = arith.constant 0 : index
    %40 = vector.load %arg6[%c0_19, %c0_20] : memref<64x32xf32, #tpu.memory_space<vmem>>, vector<64x32xf32>
    %cst_21 = arith.constant dense<0.000000e+00> : vector<8x32xf32>
    %41 = tpu.matmul %39, %40, %cst_21 {dimension_numbers = #tpu.dot_dimension_numbers<[1], [0], [0], [1], [0, 0, 1, 1], [], []>} : vector<8x64xf32>, vector<64x32xf32>, vector<8x32xf32> -> vector<8x32xf32>
    %42 = vector.broadcast %4 : vector<1x32xf32> to vector<8x32xf32>
    %43 = arith.addf %41, %42 : vector<8x32xf32>
    %cst_22 = arith.constant 0.000000e+00 : f32
    %44 = vector.broadcast %cst_22 : f32 to vector<8x32xf32>
    %45 = arith.maximumf %43, %44 : vector<8x32xf32>
    %cst_23 = arith.constant dense<0.000000e+00> : vector<1x8xf32>
    %46 = tpu.matmul %5, %45, %cst_23 {dimension_numbers = #tpu.dot_dimension_numbers<[1], [1], [0], [0], [0, 0, 1, 0], [], []>} : vector<1x32xf32>, vector<8x32xf32>, vector<1x8xf32> -> vector<1x8xf32>
    %47 = vector.broadcast %6 : vector<1x1xf32> to vector<1x8xf32>
    %48 = arith.addf %46, %47 : vector<1x8xf32>
    %c0_24 = arith.constant 0 : index
    %c0_25 = arith.constant 0 : index
    %c0_26 = arith.constant 0 : index
    %49 = vector.load %arg8[%c0_24, %c0_25, %c0_26] : memref<1x1x8xf32, #tpu.memory_space<vmem>>, vector<1x1x8xf32>
    %50 = vector.shape_cast %49 : vector<1x1x8xf32> to vector<1x8xf32>
    %51 = vector.shape_cast %48 : vector<1x8xf32> to vector<1x1x8xf32>
    tpu.vector_store %arg8[%c0_24, %c0_25, %c0_26], %51 {strides = array<i32>} : memref<1x1x8xf32, #tpu.memory_space<vmem>>, vector<1x1x8xf32>,
    return
  }
  func.func @transform_0(%arg0: i32) -> (i32, i32) {
    %c0_i32 = arith.constant 0 : i32
    %c0_i32_0 = arith.constant 0 : i32
    return %arg0, %c0_i32 : i32, i32
  }
  func.func @transform_1(%arg0: i32) -> (i32, i32) {
    %c0_i32 = arith.constant 0 : i32
    %c0_i32_0 = arith.constant 0 : i32
    %c0_i32_1 = arith.constant 0 : i32
    return %c0_i32, %c0_i32_0 : i32, i32
  }
  func.func @transform_2(%arg0: i32) -> (i32, i32) {
    %c0_i32 = arith.constant 0 : i32
    %c0_i32_0 = arith.constant 0 : i32
    %c0_i32_1 = arith.constant 0 : i32
    return %c0_i32, %c0_i32_0 : i32, i32
  }
  func.func @transform_3(%arg0: i32) -> (i32, i32) {
    %c0_i32 = arith.constant 0 : i32
    %c0_i32_0 = arith.constant 0 : i32
    %c0_i32_1 = arith.constant 0 : i32
    return %c0_i32, %c0_i32_0 : i32, i32
  }
  func.func @transform_4(%arg0: i32) -> (i32, i32) {
    %c0_i32 = arith.constant 0 : i32
    %c0_i32_0 = arith.constant 0 : i32
    %c0_i32_1 = arith.constant 0 : i32
    return %c0_i32, %c0_i32_0 : i32, i32
  }
  func.func @transform_5(%arg0: i32) -> (i32, i32) {
    %c0_i32 = arith.constant 0 : i32
    %c0_i32_0 = arith.constant 0 : i32
    %c0_i32_1 = arith.constant 0 : i32
    return %c0_i32, %c0_i32_0 : i32, i32
  }
  func.func @transform_6(%arg0: i32) -> (i32, i32) {
    %c0_i32 = arith.constant 0 : i32
    %c0_i32_0 = arith.constant 0 : i32
    %c0_i32_1 = arith.constant 0 : i32
    return %c0_i32, %c0_i32_0 : i32, i32
  }
  func.func @transform_7(%arg0: i32) -> (i32, i32, i32) {
    %c0_i32 = arith.constant 0 : i32
    %c0_i32_0 = arith.constant 0 : i32
    %c0_i32_1 = arith.constant 0 : i32
    return %arg0, %c0_i32, %c0_i32_0 : i32, i32, i32
  }
}

</mosaic_0001>

<bundles_post_ra>
// kernel: tpu_custom_call.1
= control target key start
LH: loop header
LB: loop body
LE: loop exit
PB: predicated region body
PF: predicated region fallthrough
CT: control target
= control target key end

     0   :  { %vm44_vm0 = vcmask 261120   ;;  %s1503_s0 = inlined_call_operand.vmem [shape: f32[64,32], index: 0, kind: input, shape index: {}]   ;;  %s1504_s1 = inlined_call_operand.vmem [shape: f32[32,32], index: 1, kind: input, shape index: {}]   ;;  %s1505_s2 = inlined_call_operand.vmem [shape: f32[32,32], index: 2, kind: input, shape index: {}]   ;;  %s1506_s3 = inlined_call_operand.vmem [shape: f32[32,64], index: 3, kind: input, shape index: {}]   ;;  %s1507_s4 = inlined_call_operand.vmem [shape: f32[32,64], index: 4, kind: input, shape index: {}]   ;;  %s1508_s5 = inlined_call_operand.vmem [shape: f32[64,32], index: 5, kind: input, shape index: {}]   ;;  %s1509_s6 = inlined_call_operand.vmem [shape: f32[8,64], index: 6, kind: input, shape index: {}]   ;;  %s1510_s7 = inlined_call_operand.hbm [shape: f32[1,1,8], index: 7, kind: output, shape index: {}]  }
   0x1   :  { %v39_v0 = vld [vmem:[%s1504_s1 + $0x18] sm:$0xff]  ;;  %v38_v1 = vld [vmem:[%s1504_s1 + $0x10] sm:$0xff]  ;;  %v28_v2 = vld [vmem:[%s1503_s0] sm:$0xff] }
   0x2   :  { %1089 = vmatprep.subr.mxu0 %v39_v0  ;;  %v37_v3 = vld [vmem:[%s1504_s1 + $0x8] sm:$0xff]  ;;  %1097 = vmatprep.mubr.msk.f32.mxu0 %vm44_vm0, %v28_v2  ;;  %v36_v4 = vld [vmem:[%s1504_s1] sm:$0xff] }
   0x3   :  { %1090 = vmatpush3.msra.mxu0 %v39_v0 }
   0x4   :  { %1091 = vmatprep.subr.mxu0 %v38_v1 }
   0x5   :  { %1092 = vmatpush3.msra.mxu0 %v38_v1 }
   0x6   :  { %12 = vsyncpa [#allocation3], 0  ;;  %1093 = vmatprep.subr.mxu0 %v37_v3  ;;  %v29_v5 = vld [vmem:[%s1503_s0 + $0x8] sm:$0xff]  ;;  %v30_v6 = vld [vmem:[%s1503_s0 + $0x10] sm:$0xff]  ;;  %v40_v16 = vlaneseq  ;;  %vm1253_vm1 = vmmov 0   ;;  %vm573_vm2 = vcmask 523264  }
   0x7   :  { %1094 = vmatpush3.msra.mxu0 %v37_v3  ;;  %v31_v7 = vld [vmem:[%s1503_s0 + $0x18] sm:$0xff]  ;;  %v32_v8 = vld [vmem:[%s1503_s0 + $0x20] sm:$0xff]  ;;  %v33_v9 = vld [vmem:[%s1503_s0 + $0x28] sm:$0xff]  ;;  %vm810_vm3 = vcmask 1041409   ;;  %vm812_vm4 = vcmask 1042434   ;;  %vm814_vm5 = vcmask 1043459  }
   0x8   :  { %1095 = vmatprep.subr.mxu0 %v36_v4  ;;  %v34_v10 = vld [vmem:[%s1503_s0 + $0x30] sm:$0xff]  ;;  %v35_v11 = vld [vmem:[%s1503_s0 + $0x38] sm:$0xff]  ;;  %v183_v14 = vld [vmem:[%s1505_s2 + $0x8] sm:$0xff]  ;;  %v1352_v17 = vshrl.u32 %v40_v16, 7  ;;  %vm816_vm6 = vcmask 1044484   ;;  %vm818_vm7 = vcmask 1045509  }
   0x9   :  { %1096 = vmatpush3.msra.mxu0 %v36_v4  ;;  %v185_v12 = vld [vmem:[%s1505_s2 + $0x18] sm:$0xff]  ;;  %v184_v13 = vld [vmem:[%s1505_s2 + $0x10] sm:$0xff]  ;;  %v182_v15 = vld [vmem:[%s1505_s2] sm:$0xff]  ;;  %vm820_vm8 = vcmask 1046534   ;;  %vm822_vm9 = vcmask 1047559   ;;  %vm979_vm10 = vcmask 57344  }
   0xa   :  { %1098 = vmatmul.mubr.msk.f32.vlgmr.msra.gmra.mxu0 %vm44_vm0, %v29_v5  ;;  %1109 = vmatprep.subr.mxu1 %v185_v12  ;;  %v42_v18 = vsub.s32 0, %v1352_v17  ;;  %v1358_v19 = vld [vmem:[%s1509_s6] sm:$0xff]  ;;  %v330_v45 = vld [vmem:[%s1506_s3 + $0x18] sm:$0xff]  ;;  %v329_v47 = vld [vmem:[%s1506_s3 + $0x10] sm:$0xff]  ;;  %v188_v53 = vsub.s32 1, %v1352_v17 }
   0xb   :  { %1100 = vmatprep.mubr.msk.f32.mxu0 %vm44_vm0, %v30_v6  ;;  %1110 = vmatpush3.msra.mxu1 %v185_v12  ;;  %v463_v46 = vld [vmem:[%s1507_s4 + $0x18] sm:$0xff]  ;;  %v462_v48 = vld [vmem:[%s1507_s4 + $0x10] sm:$0xff]  ;;  %v328_v49 = vld [vmem:[%s1506_s3 + $0x8] sm:$0xff] }
   0xc   :  { %1111 = vmatprep.subr.mxu1 %v184_v13  ;;  %v43_v20 = vrot.slane %v1358_v19, %v42_v18  ;;  %1129 = vmatprep.subr.mxu0 %v330_v45  ;;  %v461_v50 = vld [vmem:[%s1507_s4 + $0x8] sm:$0xff]  ;;  %v327_v51 = vld [vmem:[%s1506_s3] sm:$0xff]  ;;  %v189_v54 = vrot.slane %v1358_v19, %v188_v53  ;;  %v797_v16 = vld [vmem:[%s1508_s5 + $0x38] sm:$0xff] }
   0xd   :  { %1112 = vmatpush3.msra.mxu1 %v184_v13  ;;  %1130 = vmatpush3.msra.mxu0 %v330_v45  ;;  %v460_v52 = vld [vmem:[%s1507_s4] sm:$0xff]  ;;  %v796_v18 = vld [vmem:[%s1508_s5 + $0x30] sm:$0xff] }
   0xe   :  { %1101 = vmatmul.mubr.msk.f32.gmra.mxu0 %vm44_vm0, %v31_v7  ;;  %1113 = vmatprep.subr.mxu1 %v183_v14 }
   0xf   :  { %1103 = vmatprep.mubr.msk.f32.mxu0 %vm44_vm0, %v32_v8  ;;  %1114 = vmatpush3.msra.mxu1 %v183_v14 }
  0x10   :  { %1115 = vmatprep.subr.mxu1 %v182_v15  ;;  %1131 = vmatprep.subr.mxu0 %v329_v47 }
  0x11   :  { %1116 = vmatpush3.msra.mxu1 %v182_v15  ;;  %1132 = vmatpush3.msra.mxu0 %v329_v47  ;;  %v1252_v15 = vmov 0.0  }
  0x12   :  { %1104 = vmatmul.mubr.msk.f32.gmra.mxu0 %vm44_vm0, %v33_v9  ;;  %1149 = vmatprep.subr.mxu1 %v463_v46 }
  0x13   :  { %1106 = vmatprep.mubr.msk.f32.mxu0 %vm44_vm0, %v34_v10  ;;  %1133 = vmatprep.subr.mxu0 %v328_v49 }
  0x14   :  { %1134 = vmatpush3.msra.mxu0 %v328_v49 }
  0x15   :  { %1135 = vmatprep.subr.mxu0 %v327_v51 }
  0x16   :  { %1107 = vmatmul.mubr.msk.f32.gmra.mxu0 %vm44_vm0, %v35_v11 }
  0x17   :  { %1136 = vmatpush3.msra.mxu0 %v327_v51 }
  0x18   :  { %1169 = vmatprep.subr.mxu0 %v1252_v15 }
  0xca   :  { %v1099_v21 = vpop.f32.mrf.mxu0 }
  0xcb   :  { %v141_v22 = vadd.f32 %v1099_v21, %v43_v20  ;;  %v794_v21 = vld [vmem:[%s1508_s5 + $0x20] sm:$0xff] }
  0xcc   :  { %v135_v23 = vpop.f32.mrf.mxu0 }
  0xcd   :  { %v136_v24 = vadd.f32 %v135_v23, %v43_v20  ;;  %v175_v27 = vmax.f32 %v141_v22, 0.0  ;;  %v793_v22 = vld [vmem:[%s1508_s5 + $0x18] sm:$0xff]  ;;  %v792_v23 = vld [vmem:[%s1508_s5 + $0x10] sm:$0xff] }
  0xce   :  { %v1102_v25 = vpop.f32.mrf.mxu0 }
  0xcf   :  { %v174_v26 = vmax.f32 %v136_v24, 0.0  ;;  %v151_v28 = vadd.f32 %v1102_v25, %v43_v20  ;;  %v791_v24 = vld [vmem:[%s1508_s5 + $0x8] sm:$0xff]  ;;  %v790_v25 = vld [vmem:[%s1508_s5] sm:$0xff] }
  0xd0   :  { %v145_v29 = vpop.f32.mrf.mxu0 }
  0xd1   :  { %v146_v30 = vadd.f32 %v145_v29, %v43_v20  ;;  %1117 = vmatprep.mubr.msk.f32.mxu1 %vm44_vm0, %v174_v26  ;;  %v177_v33 = vmax.f32 %v151_v28, 0.0 }
  0xd2   :  { %v1105_v31 = vpop.f32.mrf.mxu0  ;;  %1118 = vmatmul.mubr.msk.f32.vlgmr.msra.gmra.mxu1 %vm44_vm0, %v175_v27 }
  0xd3   :  { %v176_v32 = vmax.f32 %v146_v30, 0.0  ;;  %v161_v34 = vadd.f32 %v1105_v31, %v43_v20  ;;  %1150 = vmatpush3.msra.mxu1 %v463_v46 }
  0xd4   :  { %v155_v35 = vpop.f32.mrf.mxu0  ;;  %1151 = vmatprep.subr.mxu1 %v462_v48 }
  0xd5   :  { %v156_v36 = vadd.f32 %v155_v35, %v43_v20  ;;  %1120 = vmatprep.mubr.msk.f32.mxu1 %vm44_vm0, %v176_v32  ;;  %v179_v39 = vmax.f32 %v161_v34, 0.0  ;;  %1152 = vmatpush3.msra.mxu1 %v462_v48 }
  0xd6   :  { %v1108_v37 = vpop.f32.mrf.mxu0  ;;  %1121 = vmatmul.mubr.msk.f32.gmra.mxu1 %vm44_vm0, %v177_v33  ;;  %1153 = vmatprep.subr.mxu1 %v461_v50 }
  0xd7   :  { %v178_v38 = vmax.f32 %v156_v36, 0.0  ;;  %v171_v40 = vadd.f32 %v1108_v37, %v43_v20  ;;  %1154 = vmatpush3.msra.mxu1 %v461_v50 }
  0xd8   :  { %v165_v41 = vpop.f32.mrf.mxu0  ;;  %1155 = vmatprep.subr.mxu1 %v460_v52 }
  0xd9   :  { %v166_v42 = vadd.f32 %v165_v41, %v43_v20  ;;  %1123 = vmatprep.mubr.msk.f32.mxu1 %vm44_vm0, %v178_v38  ;;  %v181_v44 = vmax.f32 %v171_v40, 0.0  ;;  %1156 = vmatpush3.msra.mxu1 %v460_v52  ;;  %v795_v20 = vld [vmem:[%s1508_s5 + $0x28] sm:$0xff]  ;;  %s1255_s5 = smov [#allocation2]  }
  0xda   :  { %1124 = vmatmul.mubr.msk.f32.gmra.mxu1 %vm44_vm0, %v179_v39  ;;  %1188 = vmatprep.subr.mxu1 %v1252_v15  ;;  %s987_s11 = sshll.u32 %s1255_s5, 4  ;;  %s988_s11 = int_to_ptr.vmem [resolvable:$true] %s987_s11 }
  0xdb   :  { %v180_v43 = vmax.f32 %v166_v42, 0.0  ;;  %s1230_s12 = scalar_lea.vmem %s988_s11, 16  ;;  %s1234_s13 = scalar_lea.vmem %s988_s11, 32 }
  0xdc   :  { %p1231_p0 = scmp.ne.s32.totalorder %s988_s11, %s1230_s12  ;;  %p1235_p1 = scmp.lt.s32.totalorder %s988_s11, %s988_s11 }
  0xdd   :  { %1126 = vmatprep.mubr.msk.f32.mxu1 %vm44_vm0, %v180_v43  ;;  %p1236_p2 = scmp.lt.s32.totalorder %s1234_s13, %s1230_s12 }
  0xde   :  { %1127 = vmatmul.mubr.msk.f32.gmra.mxu1 %vm44_vm0, %v181_v44 }
  0xdf   :  { %p1237_p3 = por %p1236_p2, %p1235_p1 }
  0xe1   :  { %p1238_p4 = pnand %p1237_p3, %p1231_p0 }
 0x192   :  { %v1119_v55 = vpop.f32.mrf.mxu1 }
 0x193   :  { %v286_v56 = vadd.f32 %v1119_v55, %v189_v54 }
 0x194   :  { %v280_v57 = vpop.f32.mrf.mxu1 }
 0x195   :  { %v281_v58 = vadd.f32 %v280_v57, %v189_v54  ;;  %v320_v61 = vmax.f32 %v286_v56, 0.0 }
 0x196   :  { %v1122_v59 = vpop.f32.mrf.mxu1 }
 0x197   :  { %v319_v60 = vmax.f32 %v281_v58, 0.0  ;;  %v296_v62 = vadd.f32 %v1122_v59, %v189_v54 }
 0x198   :  { %v290_v63 = vpop.f32.mrf.mxu1 }
 0x199   :  { %v291_v0 = vadd.f32 %v290_v63, %v189_v54  ;;  %1137 = vmatprep.mubr.msk.f32.mxu0 %vm44_vm0, %v319_v60  ;;  %1157 = vmatprep.mubr.msk.f32.mxu1 %vm44_vm0, %v319_v60  ;;  %v322_v3 = vmax.f32 %v296_v62, 0.0 }
 0x19a   :  { %v1125_v1 = vpop.f32.mrf.mxu1  ;;  %1138 = vmatmul.mubr.msk.f32.vlgmr.msra.gmra.mxu0 %vm44_vm0, %v320_v61  ;;  %1158 = vmatmul.mubr.msk.f32.vlgmr.msra.gmra.mxu1 %vm44_vm0, %v320_v61 }
 0x19b   :  { %v321_v2 = vmax.f32 %v291_v0, 0.0  ;;  %v306_v4 = vadd.f32 %v1125_v1, %v189_v54  ;;  %1170 = vmatpush3.msra.mxu0 %v797_v16 }
 0x19c   :  { %v300_v5 = vpop.f32.mrf.mxu1  ;;  %1171 = vmatprep.subr.mxu0 %v1252_v15 }
 0x19d   :  { %v301_v6 = vadd.f32 %v300_v5, %v189_v54  ;;  %1140 = vmatprep.mubr.msk.f32.mxu0 %vm44_vm0, %v321_v2  ;;  %1160 = vmatprep.mubr.msk.f32.mxu1 %vm44_vm0, %v321_v2  ;;  %v324_v9 = vmax.f32 %v306_v4, 0.0 }
 0x19e   :  { %v1128_v7 = vpop.f32.mrf.mxu1  ;;  %1141 = vmatmul.mubr.msk.f32.gmra.mxu0 %vm44_vm0, %v322_v3  ;;  %1161 = vmatmul.mubr.msk.f32.gmra.mxu1 %vm44_vm0, %v322_v3 }
 0x19f   :  { %v323_v8 = vmax.f32 %v301_v6, 0.0  ;;  %v316_v10 = vadd.f32 %v1128_v7, %v189_v54  ;;  %1172 = vmatpush3.msra.mxu0 %v796_v18 }
 0x1a0   :  { %v310_v11 = vpop.f32.mrf.mxu1  ;;  %1173 = vmatprep.subr.mxu0 %v1252_v15 }
 0x1a1   :  { %v311_v12 = vadd.f32 %v310_v11, %v189_v54  ;;  %1143 = vmatprep.mubr.msk.f32.mxu0 %vm44_vm0, %v323_v8  ;;  %1163 = vmatprep.mubr.msk.f32.mxu1 %vm44_vm0, %v323_v8  ;;  %v326_v14 = vmax.f32 %v316_v10, 0.0 }
 0x1a2   :  { %1144 = vmatmul.mubr.msk.f32.gmra.mxu0 %vm44_vm0, %v324_v9  ;;  %1164 = vmatmul.mubr.msk.f32.gmra.mxu1 %vm44_vm0, %v324_v9 }
 0x1a3   :  { %v325_v13 = vmax.f32 %v311_v12, 0.0  ;;  %1174 = vmatpush3.msra.mxu0 %v795_v20 }
 0x1a4   :  { %1175 = vmatprep.subr.mxu0 %v1252_v15 }
 0x1a5   :  { %1146 = vmatprep.mubr.msk.f32.mxu0 %vm44_vm0, %v325_v13  ;;  %1166 = vmatprep.mubr.msk.f32.mxu1 %vm44_vm0, %v325_v13 }
 0x1a6   :  { %1147 = vmatmul.mubr.msk.f32.gmra.mxu0 %vm44_vm0, %v326_v14  ;;  %1167 = vmatmul.mubr.msk.f32.gmra.mxu1 %vm44_vm0, %v326_v14 }
 0x1a7   :  { %1176 = vmatpush3.msra.mxu0 %v794_v21  ;;  %1185 = vmatprep.mubr.msk.f32.mxu0 %vm1253_vm1, %v1252_v15 }
 0x1a8   :  { %1177 = vmatprep.subr.mxu0 %v1252_v15  ;;  %1190 = vmatprep.mubr.msk.f32.mxu1 %vm1253_vm1, %v1252_v15 }
 0x1a9   :  { %1178 = vmatpush3.msra.mxu0 %v793_v22 }
 0x1aa   :  { %1179 = vmatprep.subr.mxu0 %v1252_v15 }
 0x1ab   :  { %1180 = vmatpush3.msra.mxu0 %v792_v23 }
 0x1ac   :  { %1181 = vmatprep.subr.mxu0 %v1252_v15 }
 0x1ad   :  { %1182 = vmatpush3.msra.mxu0 %v791_v24 }
 0x1ae   :  { %1183 = vmatprep.subr.mxu0 %v1252_v15 }
 0x1af   :  { %1184 = vmatpush3.msra.mxu0 %v790_v25 }
 0x25a   :  { %v1139_v26 = vpop.f32.mrf.mxu0 }
 0x25b   :  { %v581_v27 = vsel %vm573_vm2, %v1139_v26, -inf }
 0x25c   :  { %v582_v28 = vrot.slane %v581_v27, 4  ;;  %v421_v29 = vpop.f32.mrf.mxu0 }
 0x25d   :  { %v574_v30 = vsel %vm573_vm2, %v421_v29, -inf }
 0x25e   :  { %v583_v31 = vmax.f32 %v581_v27, %v582_v28  ;;  %v575_v32 = vrot.slane %v574_v30, 4  ;;  %v1142_v33 = vpop.f32.mrf.mxu0 }
 0x25f   :  { %v595_v34 = vsel %vm573_vm2, %v1142_v33, -inf }
 0x260   :  { %v584_v35 = vrot.slane %v583_v31, 2  ;;  %v576_v36 = vmax.f32 %v574_v30, %v575_v32  ;;  %v596_v37 = vrot.slane %v595_v34, 4  ;;  %v431_v38 = vpop.f32.mrf.mxu0 }
 0x261   :  { %v588_v39 = vsel %vm573_vm2, %v431_v38, -inf }
 0x262   :  { %v585_v40 = vmax.f32 %v583_v31, %v584_v35  ;;  %v577_v41 = vrot.slane %v576_v36, 2  ;;  %v597_v42 = vmax.f32 %v595_v34, %v596_v37  ;;  %v589_v43 = vrot.slane %v588_v39, 4  ;;  %v1145_v44 = vpop.f32.mrf.mxu0 }
 0x263   :  { %v609_v45 = vsel %vm573_vm2, %v1145_v44, -inf }
 0x264   :  { %v586_v46 = vrot.slane %v585_v40, 1  ;;  %v578_v47 = vmax.f32 %v576_v36, %v577_v41  ;;  %v598_v48 = vrot.slane %v597_v42, 2  ;;  %v590_v49 = vmax.f32 %v588_v39, %v589_v43  ;;  %v441_v50 = vpop.f32.mrf.mxu0 }
 0x265   :  { %v610_v51 = vrot.slane %v609_v45, 4  ;;  %v602_v52 = vsel %vm573_vm2, %v441_v50, -inf }
 0x266   :  { %v587_v53 = vmax.f32 %v585_v40, %v586_v46  ;;  %v579_v54 = vrot.slane %v578_v47, 1  ;;  %v599_v55 = vmax.f32 %v597_v42, %v598_v48  ;;  %v591_v56 = vrot.slane %v590_v49, 2  ;;  %v1148_v57 = vpop.f32.mrf.mxu0 }
 0x267   :  { %v611_v58 = vmax.f32 %v609_v45, %v610_v51  ;;  %v603_v59 = vrot.slane %v602_v52, 4  ;;  %v623_v60 = vsel %vm573_vm2, %v1148_v57, -inf }
 0x268   :  { %v631_v61 = vsub.f32 %v1139_v26, %v587_v53  ;;  %v580_v62 = vmax.f32 %v578_v47, %v579_v54  ;;  %v600_v63 = vrot.slane %v599_v55, 1  ;;  %v592_v0 = vmax.f32 %v590_v49, %v591_v56  ;;  %v451_v1 = vpop.f32.mrf.mxu0 }
 0x269   :  { %v612_v2 = vrot.slane %v611_v58, 2  ;;  %v604_v3 = vmax.f32 %v602_v52, %v603_v59  ;;  %v624_v4 = vrot.slane %v623_v60, 4  ;;  %v616_v5 = vsel %vm573_vm2, %v451_v1, -inf }
 0x26a   :  { %v640_v6 = vmul.f32 1.442695, %v631_v61  ;;  %v630_v7 = vsub.f32 %v421_v29, %v580_v62  ;;  %v601_v8 = vmax.f32 %v599_v55, %v600_v63  ;;  %v593_v9 = vrot.slane %v592_v0, 1 }
 0x26b   :  { %v613_v10 = vmax.f32 %v611_v58, %v612_v2  ;;  %v605_v11 = vrot.slane %v604_v3, 2  ;;  %v625_v12 = vmax.f32 %v623_v60, %v624_v4  ;;  %v617_v13 = vrot.slane %v616_v5, 4 }
 0x26c   :  { %1198 = vpow2.f32 %v640_v6  ;;  %v638_v14 = vmul.f32 1.442695, %v630_v7  ;;  %v633_v15 = vsub.f32 %v1142_v33, %v601_v8  ;;  %v594_v16 = vmax.f32 %v592_v0, %v593_v9 }
 0x26d   :  { %v614_v18 = vrot.slane %v613_v10, 1  ;;  %v606_v20 = vmax.f32 %v604_v3, %v605_v11  ;;  %v626_v21 = vrot.slane %v625_v12, 2  ;;  %v618_v22 = vmax.f32 %v616_v5, %v617_v13  ;;  %v1159_v5 = vpop.f32.mrf.mxu1 }
 0x26e   :  { %1200 = vpow2.f32 %v638_v14  ;;  %v644_v23 = vmul.f32 1.442695, %v633_v15  ;;  %v632_v24 = vsub.f32 %v431_v38, %v594_v16 }
 0x26f   :  { %v615_v25 = vmax.f32 %v613_v10, %v614_v18  ;;  %v607_v26 = vrot.slane %v606_v20, 1  ;;  %v627_v27 = vmax.f32 %v625_v12, %v626_v21  ;;  %v619_v28 = vrot.slane %v618_v22, 2 }
 0x270   :  { %1202 = vpow2.f32 %v644_v23  ;;  %v642_v29 = vmul.f32 1.442695, %v632_v24 }
 0x271   :  { %v635_v30 = vsub.f32 %v1145_v44, %v615_v25  ;;  %v608_v31 = vmax.f32 %v606_v20, %v607_v26  ;;  %v628_v32 = vrot.slane %v627_v27, 1  ;;  %v620_v34 = vmax.f32 %v618_v22, %v619_v28  ;;  %v534_v22 = vpop.f32.mrf.mxu1 }
 0x272   :  { %1204 = vpow2.f32 %v642_v29 }
 0x273   :  { %v648_v33 = vmul.f32 1.442695, %v635_v30  ;;  %v634_v35 = vsub.f32 %v441_v50, %v608_v31  ;;  %v629_v36 = vmax.f32 %v627_v27, %v628_v32  ;;  %v621_v37 = vrot.slane %v620_v34, 1 }
 0x275   :  { %1206 = vpow2.f32 %v648_v33  ;;  %v646_v39 = vmul.f32 1.442695, %v634_v35  ;;  %v637_v40 = vsub.f32 %v1148_v57, %v629_v36  ;;  %v622_v41 = vmax.f32 %v620_v34, %v621_v37  ;;  %v1162_v35 = vpop.f32.mrf.mxu1 }
 0x276   :  { %v466_v33 = vsub.s32 2, %v1352_v17 }
 0x277   :  { %1208 = vpow2.f32 %v646_v39  ;;  %v652_v38 = vmul.f32 1.442695, %v637_v40  ;;  %v636_v42 = vsub.f32 %v451_v1, %v622_v41 }
 0x279   :  { %v1443_v43 = vpop.eup %1198  ;;  %1210 = vpow2.f32 %v652_v38  ;;  %v650_v45 = vmul.f32 1.442695, %v636_v42 }
 0x27a   :  { %v661_v44 = vsel %vm573_vm2, %v1443_v43, 0.0 }
 0x27b   :  { %v1447_v46 = vpop.eup %1200  ;;  %v662_v47 = vrot.slane %v661_v44, 4  ;;  %1212 = vpow2.f32 %v650_v45 }
 0x27c   :  { %v654_v48 = vsel %vm573_vm2, %v1447_v46, 0.0 }
 0x27d   :  { %v1451_v49 = vpop.eup %1202  ;;  %v663_v50 = vadd.f32 %v662_v47, %v661_v44  ;;  %v655_v51 = vrot.slane %v654_v48, 4  ;;  %v467_v44 = vrot.slane %v1358_v19, %v466_v33  ;;  %v544_v47 = vpop.f32.mrf.mxu1 }
 0x27e   :  { %v675_v52 = vsel %vm573_vm2, %v1451_v49, 0.0 }
 0x27f   :  { %v1455_v53 = vpop.eup %1204  ;;  %v664_v54 = vrot.slane %v663_v50, 2  ;;  %v656_v55 = vadd.f32 %v655_v51, %v654_v48  ;;  %v676_v56 = vrot.slane %v675_v52, 4 }
 0x280   :  { %v668_v57 = vsel %vm573_vm2, %v1455_v53, 0.0 }
 0x281   :  { %v665_v58 = vadd.f32 %v664_v54, %v663_v50  ;;  %v657_v59 = vrot.slane %v656_v55, 2  ;;  %v677_v60 = vadd.f32 %v676_v56, %v675_v52  ;;  %v669_v61 = vrot.slane %v668_v57, 4 }
 0x282   :  { %v1459_v62 = vpop.eup %1206  ;;  %v540_v56 = vadd.f32 %v1159_v5, %v467_v44 }
 0x283   :  { %v666_v63 = vrot.slane %v665_v58, 1  ;;  %v658_v0 = vadd.f32 %v657_v59, %v656_v55  ;;  %v678_v1 = vrot.slane %v677_v60, 2  ;;  %v670_v2 = vadd.f32 %v669_v61, %v668_v57 }
 0x284   :  { %v1461_v3 = vpop.eup %1208  ;;  %v689_v4 = vsel %vm573_vm2, %v1459_v62, 0.0 }
 0x285   :  { %v667_v6 = vadd.f32 %v666_v63, %v665_v58  ;;  %v659_v7 = vrot.slane %v658_v0, 1  ;;  %v679_v8 = vadd.f32 %v678_v1, %v677_v60  ;;  %v671_v9 = vrot.slane %v670_v2, 2  ;;  %v1165_v58 = vpop.f32.mrf.mxu1 }
 0x286   :  { %v1465_v10 = vpop.eup %1210  ;;  %v690_v11 = vrot.slane %v689_v4, 4  ;;  %v682_v12 = vsel %vm573_vm2, %v1461_v3, 0.0  ;;  %v535_v63 = vadd.f32 %v534_v22, %v467_v44 }
 0x287   :  { %1214 = vrcp.f32 %v667_v6  ;;  %v660_v13 = vadd.f32 %v659_v7, %v658_v0  ;;  %v680_v14 = vrot.slane %v679_v8, 1  ;;  %v672_v15 = vadd.f32 %v671_v9, %v670_v2 }
 0x288   :  { %v1469_v16 = vpop.eup %1212  ;;  %v691_v18 = vadd.f32 %v690_v11, %v689_v4  ;;  %v683_v20 = vrot.slane %v682_v12, 4  ;;  %v703_v21 = vsel %vm573_vm2, %v1465_v10, 0.0  ;;  %v550_v6 = vadd.f32 %v1162_v35, %v467_v44 }
 0x289   :  { %1216 = vrcp.f32 %v660_v13  ;;  %v681_v23 = vadd.f32 %v680_v14, %v679_v8  ;;  %v673_v24 = vrot.slane %v672_v15, 1  ;;  %v704_v25 = vrot.slane %v703_v21, 4  ;;  %v554_v8 = vpop.f32.mrf.mxu1 }
 0x28a   :  { %v692_v26 = vrot.slane %v691_v18, 2  ;;  %v684_v27 = vadd.f32 %v683_v20, %v682_v12  ;;  %v696_v28 = vsel %vm573_vm2, %v1469_v16, 0.0  ;;  %v545_v12 = vadd.f32 %v544_v47, %v467_v44 }
 0x28b   :  { %1218 = vrcp.f32 %v681_v23  ;;  %v674_v29 = vadd.f32 %v673_v24, %v672_v15  ;;  %v705_v30 = vadd.f32 %v704_v25, %v703_v21  ;;  %v697_v31 = vrot.slane %v696_v28, 4 }
 0x28c   :  { %v693_v32 = vadd.f32 %v692_v26, %v691_v18  ;;  %v685_v34 = vrot.slane %v684_v27, 2  ;;  %v1168_v18 = vpop.f32.mrf.mxu1 }
 0x28d   :  { %1220 = vrcp.f32 %v674_v29  ;;  %v706_v36 = vrot.slane %v705_v30, 2  ;;  %v698_v37 = vadd.f32 %v697_v31, %v696_v28 }
 0x28e   :  { %v694_v39 = vrot.slane %v693_v32, 1  ;;  %v686_v40 = vadd.f32 %v685_v34, %v684_v27  ;;  %v560_v27 = vadd.f32 %v1165_v58, %v467_v44  ;;  %v564_v29 = vpop.f32.mrf.mxu1  ;;  %v555_v34 = vadd.f32 %v554_v8, %v467_v44 }
 0x28f   :  { %v707_v41 = vadd.f32 %v706_v36, %v705_v30  ;;  %v699_v38 = vrot.slane %v698_v37, 2  ;;  %v570_v36 = vadd.f32 %v1168_v18, %v467_v44 }
 0x290   :  { %v695_v42 = vadd.f32 %v694_v39, %v693_v32  ;;  %v687_v45 = vrot.slane %v686_v40, 1 }
 0x291   :  { %v708_v48 = vrot.slane %v707_v41, 1  ;;  %v700_v50 = vadd.f32 %v699_v38, %v698_v37  ;;  %v565_v38 = vadd.f32 %v564_v29, %v467_v44 }
 0x292   :  { %1222 = vrcp.f32 %v695_v42  ;;  %v688_v51 = vadd.f32 %v687_v45, %v686_v40 }
 0x293   :  { %v709_v52 = vadd.f32 %v708_v48, %v707_v41  ;;  %v701_v54 = vrot.slane %v700_v50, 1 }
 0x294   :  { %v1215_v55 = vpop.eup %1214  ;;  %1224 = vrcp.f32 %v688_v51 }
 0x295   :  { %v719_v57 = vmul.f32 %v1215_v55, %v1443_v43  ;;  %1226 = vrcp.f32 %v709_v52  ;;  %v702_v59 = vadd.f32 %v701_v54, %v700_v50 }
 0x296   :  { %v1217_v60 = vpop.eup %1216 }
 0x297   :  { %v727_v61 = vmul.f32 %v719_v57, %v540_v56  ;;  %v718_v0 = vmul.f32 %v1217_v60, %v1447_v46  ;;  %1228 = vrcp.f32 %v702_v59 }
 0x298   :  { %v1219_v1 = vpop.eup %1218 }
 0x299   :  { %v741_v2 = vsel %vm573_vm2, %v727_v61, 0.0  ;;  %v726_v4 = vmul.f32 %v718_v0, %v535_v63  ;;  %v721_v7 = vmul.f32 %v1219_v1, %v1451_v49 }
 0x29a   :  { %v1221_v5 = vpop.eup %1220  ;;  %v742_v9 = vrot.slane %v741_v2, 4 }
 0x29b   :  { %v734_v43 = vsel %vm573_vm2, %v726_v4, 0.0  ;;  %v729_v11 = vmul.f32 %v721_v7, %v550_v6  ;;  %v720_v13 = vmul.f32 %v1221_v5, %v1455_v53 }
 0x29c   :  { %v735_v14 = vrot.slane %v734_v43, 4  ;;  %v743_v20 = vadd.f32 %v742_v9, %v741_v2 }
 0x29d   :  { %v755_v46 = vsel %vm573_vm2, %v729_v11, 0.0  ;;  %v728_v15 = vmul.f32 %v720_v13, %v545_v12 }
 0x29e   :  { %v736_v21 = vadd.f32 %v735_v14, %v734_v43  ;;  %v756_v22 = vrot.slane %v755_v46, 4  ;;  %v744_v53 = vrot.slane %v743_v20, 2 }
 0x29f   :  { %v1223_v23 = vpop.eup %1222  ;;  %v748_v49 = vsel %vm573_vm2, %v728_v15, 0.0 }
 0x2a0   :  { %v737_v24 = vrot.slane %v736_v21, 2  ;;  %v749_v25 = vrot.slane %v748_v49, 4  ;;  %v723_v28 = vmul.f32 %v1223_v23, %v1459_v62  ;;  %v757_v31 = vadd.f32 %v756_v22, %v755_v46 }
 0x2a1   :  { %v1225_v26 = vpop.eup %1224  ;;  %v745_v48 = vadd.f32 %v744_v53, %v743_v20 }
 0x2a2   :  { %v1227_v30 = vpop.eup %1226  ;;  %v750_v32 = vadd.f32 %v749_v25, %v748_v49  ;;  %v731_v33 = vmul.f32 %v723_v28, %v560_v27  ;;  %v722_v35 = vmul.f32 %v1225_v26, %v1461_v3  ;;  %v738_v40 = vadd.f32 %v737_v24, %v736_v21 }
 0x2a3   :  { %v725_v37 = vmul.f32 %v1227_v30, %v1465_v10  ;;  %v758_v50 = vrot.slane %v757_v31, 2  ;;  %v746_v60 = vrot.slane %v745_v48, 1 }
 0x2a4   :  { %v1229_v39 = vpop.eup %1228  ;;  %v751_v41 = vrot.slane %v750_v32, 2  ;;  %v769_v42 = vsel %vm573_vm2, %v731_v33, 0.0  ;;  %v730_v45 = vmul.f32 %v722_v35, %v555_v34  ;;  %v739_v10 = vrot.slane %v738_v40, 1 }
 0x2a5   :  { %v733_v62 = vmul.f32 %v725_v37, %v570_v36  ;;  %v724_v47 = vmul.f32 %v1229_v39, %v1469_v16  ;;  %v770_v52 = vrot.slane %v769_v42, 4  ;;  %v759_v61 = vadd.f32 %v758_v50, %v757_v31 }
 0x2a6   :  { %v752_v51 = vadd.f32 %v751_v41, %v750_v32  ;;  %v762_v54 = vsel %vm573_vm2, %v730_v45, 0.0  ;;  %v740_v2 = vadd.f32 %v739_v10, %v738_v40  ;;  %v747_v9 = vadd.f32 %v746_v60, %v745_v48 }
 0x2a7   :  { %v783_v3 = vsel %vm573_vm2, %v733_v62, 0.0  ;;  %v732_v55 = vmul.f32 %v724_v47, %v565_v38  ;;  %v771_v56 = vadd.f32 %v770_v52, %v769_v42  ;;  %v763_v58 = vrot.slane %v762_v54, 4 }
 0x2a8   :  { %v753_v57 = vrot.slane %v752_v51, 1  ;;  %v784_v44 = vrot.slane %v783_v3, 4  ;;  %v760_v43 = vrot.slane %v759_v61, 1  ;;  %v811_v14 = vsel %vm810_vm3, %v747_v9, %v740_v2 }
 0x2a9   :  { %v776_v59 = vsel %vm573_vm2, %v732_v55, 0.0  ;;  %v772_v63 = vrot.slane %v771_v56, 2  ;;  %v764_v0 = vadd.f32 %v763_v58, %v762_v54  ;;  %v1254_v31 = vmov 0  }
 0x2aa   :  { %v777_v16 = vrot.slane %v776_v59, 4  ;;  %v785_v1 = vadd.f32 %v784_v44, %v783_v3  ;;  %v754_v7 = vadd.f32 %v753_v57, %v752_v51  ;;  %v761_v21 = vadd.f32 %v760_v43, %v759_v61  ;;  %1197 = vset.pattern.permute.xlu0 %v1254_v31 }
 0x2ab   :  { %v773_v4 = vadd.f32 %v772_v63, %v771_v56  ;;  %v765_v8 = vrot.slane %v764_v0, 2  ;;  %899 = vperm.xlu0 %1197, %v1358_v19   ;;  %v800_v32 = vsub.s32 3, %v1352_v17  ;;  %v901_v39 = vrot.slane %v1358_v19, 4 }
 0x2ac   :  { %v778_v6 = vadd.f32 %v777_v16, %v776_v59  ;;  %v786_v5 = vrot.slane %v785_v1, 2  ;;  %v813_v18 = vsel %vm812_vm4, %v754_v7, %v811_v14 }
 0x2ad   :  { %v766_v12 = vadd.f32 %v765_v8, %v764_v0  ;;  %v774_v46 = vrot.slane %v773_v4, 1  ;;  %v815_v25 = vsel %vm814_vm5, %v761_v21, %v813_v18  ;;  %v801_v34 = vrot.slane %v1358_v19, %v800_v32 }
 0x2ae   :  { %v779_v11 = vrot.slane %v778_v6, 2  ;;  %v787_v13 = vadd.f32 %v786_v5, %v785_v1 }
 0x2af   :  { %v767_v20 = vrot.slane %v766_v12, 1  ;;  %v775_v24 = vadd.f32 %v774_v46, %v773_v4 }
 0x2b0   :  { %v780_v15 = vadd.f32 %v779_v11, %v778_v6  ;;  %v788_v22 = vrot.slane %v787_v13, 1 }
 0x2b1   :  { %v768_v49 = vadd.f32 %v767_v20, %v766_v12 }
 0x2b2   :  { %v781_v23 = vrot.slane %v780_v15, 1  ;;  %v789_v28 = vadd.f32 %v788_v22, %v787_v13 }
 0x2b3   :  { %v817_v27 = vsel %vm816_vm6, %v768_v49, %v815_v25 }
 0x2b4   :  { %v782_v26 = vadd.f32 %v781_v23, %v780_v15  ;;  %v819_v29 = vsel %vm818_vm7, %v775_v24, %v817_v27 }
 0x2b6   :  { %v821_v30 = vsel %vm820_vm8, %v782_v26, %v819_v29 }
 0x2b7   :  { %v823_v53 = vsel %vm822_vm9, %v789_v28, %v821_v30 }
 0x2b8   :  { %1186 = vmatmul.mubr.msk.f32.vlgmr.msra.gmra.mxu0 %vm573_vm2, %v823_v53 }
 0x326   :  { %v900_v40 = vpop.permute.xlu0 %899 }
 0x327   :  { %v902_v41 = vrot.slane %v900_v40, 5 }
 0x378   :  { %v892_v33 = vpop.f32.mrf.mxu0 }
 0x379   :  { %v893_v35 = vadd.f32 %v892_v33, %v801_v34 }
 0x37a   :  { %v1187_v36 = vpop.f32.mrf.mxu0 }
 0x37b   :  { %v896_v37 = vmax.f32 %v893_v35, 0.0 }
 0x37d   :  { %1189 = vmatpush3.xpose.msk.msra.mxu1 %vm44_vm0, %v896_v37 }
 0x380   :  { %1191 = vmatmul.mubr.msk.f32.vlgmr.msra.gmra.mxu1 %vm44_vm0, %v901_v39 }
 0x440   :  { %v975_v38 = vpop.f32.mrf.mxu1 }
 0x441   :  { %v976_v42 = vadd.f32 %v975_v38, %v902_v41 }
 0x442   :  { %v1192_v17 = vpop.f32.mrf.mxu1 }
 0x443   :  { %980 = vst.msk [vmem:[#allocation2] sm:$0x1] %vm979_vm10, %v976_v42 }
 0x444   :  { %1241 = shalt.err (!%p1238_p4)
}
 0x445   :  { %990 = dma.vmem_to_hbm [thread:$0]  %s988_s11, 16, %s1510_s7, [#allocation3]  }
 0x446   :  { %1250 = dma.done.wait [#allocation3], 16  }
 0x447   :  { %1251 = vsyncadd [#allocation3], 4294967280 }
 0x448   :  { %994 = vsyncpa [#allocation3], 1 }

</bundles_post_ra>
